<compile_context>
chip_gen: v5e
topology: v5e:2x2
jax: 0.10.0
libtpu: 0.0.40
codegen_flags: <defaults>
</compile_context>

<pallas_src>
import jax
import jax.numpy as jnp
from jax.experimental import pallas as pl
from jax.experimental.pallas import tpu as pltpu

_BLOCK_BUDGET_BYTES = 6 * 1024 * 1024  # per-block copy budget (fits all gens)


def _copy_kernel(x_ref, o_ref):
    # Lane- and sublane-dense identity copy of the current block.
    o_ref[...] = x_ref[...]


def _vmem_limit(block_bytes):
    # 2 operands x 2 double-buffers x block + headroom, clamped to sane range.
    return int(min(64 << 20, max(4 * block_bytes + (4 << 20), 16 << 20)))


def view_forward(x):
    """x: (B, ...) -> (B, prod(rest)); same values as PyTorch x.view(B, -1)."""
    b = x.shape[0]
    n = 1
    for d in x.shape[1:]:
        n *= d
    total = b * n
    itemsize = jnp.dtype(x.dtype).itemsize
    # Packed sublane count: 8 (f32), 16 (bf16/f16), 32 (int8/fp8).
    sub = max(8, 32 // itemsize)

    # ---- main path: sublane+lane dense slab (rows, lane) -------------------
    # lane: multiple of 128 (prefer wide), rows = total // lane a multiple of
    # `sub` so every vreg / (8,128) tile is fully occupied.
    lane = None
    cand = min(2048, (total // sub // 128) * 128)
    while cand >= 128:
        if total % cand == 0 and (total // cand) % sub == 0:
            lane = cand
            break
        cand -= 128

    if lane is not None:
        rows = total // lane
        xs = x.reshape(rows, lane)  # metadata-only row-major reshape
        row_tile = (_BLOCK_BUDGET_BYTES // (lane * itemsize)) // sub * sub
        row_tile = max(sub, min(row_tile, rows))
        grid = (pl.cdiv(rows, row_tile),)
        block_bytes = row_tile * lane * itemsize
        out = pl.pallas_call(
            _copy_kernel,
            out_shape=jax.ShapeDtypeStruct((rows, lane), x.dtype),
            grid=grid,
            in_specs=[pl.BlockSpec((row_tile, lane), lambda i: (i, 0))],
            out_specs=pl.BlockSpec((row_tile, lane), lambda i: (i, 0)),
            compiler_params=pltpu.CompilerParams(
                dimension_semantics=("parallel",),
                vmem_limit_bytes=_vmem_limit(block_bytes),
            ),
        )(xs)
        return out.reshape(b, n)

    # ---- fallback: no dense factorization; copy as (B, N), lane-tiled ------
    x2d = x.reshape(b, n)
    if n >= 128:
        max_lane = max(128, (_BLOCK_BUDGET_BYTES // max(1, b * itemsize)) // 128 * 128)
        lane_tile = max(128, min((n // 128) * 128, max_lane))
        grid = (pl.cdiv(n, lane_tile),)  # ragged last block handled by Pallas
        block = (b, lane_tile)
    else:
        lane_tile = n
        grid = (1,)
        block = (b, n)  # full-extent block waives the (8,128) constraint
    block_bytes = b * lane_tile * itemsize
    return pl.pallas_call(
        _copy_kernel,
        out_shape=jax.ShapeDtypeStruct((b, n), x.dtype),
        grid=grid,
        in_specs=[pl.BlockSpec(block, lambda j: (0, j))],
        out_specs=pl.BlockSpec(block, lambda j: (0, j)),
        compiler_params=pltpu.CompilerParams(
            dimension_semantics=("parallel",),
            vmem_limit_bytes=_vmem_limit(block_bytes),
        ),
    )(x2d)


if __name__ == "__main__":
    key = jax.random.PRNGKey(0)
    # NCHW input as the PyTorch module would see: batch=2, channels=4, spatial=16
    x = jax.random.normal(key, (2, 4, 16, 16), dtype=jnp.float32)

    out = view_forward(x)
    out = jax.block_until_ready(out)

    # Reference: torch's input.view(input.size(0), -1) == row-major flatten
    ref = x.reshape(x.shape[0], -1)
    assert out.shape == (2, 4 * 16 * 16), out.shape
    assert jnp.array_equal(out, ref), "mismatch vs reference flatten"

    print("KERNEL_OK")
</pallas_src>

<mosaic_0001>
module attributes {stable_mosaic.version = 11 : i64} {
  func.func @_copy_kernel(%arg0: i32, %arg1: memref<8x256xf32, #tpu.memory_space<vmem>>, %arg2: memref<8x256xf32, #tpu.memory_space<vmem>>) attributes {dimension_semantics = [#tpu.dimension_semantics<parallel>], iteration_bounds = array<i64: 1>, scalar_prefetch = 0 : i64, scratch_operands = 0 : i64, tpu.core_type = #tpu.core_type<tc>, window_params = [{transform_indices = @transform_0, window_bounds = array<i64: 8, 256>}, {transform_indices = @transform_1, window_bounds = array<i64: 8, 256>}]} {
    %c0 = arith.constant 0 : index
    %c0_0 = arith.constant 0 : index
    %0 = vector.load %arg1[%c0, %c0_0] : memref<8x256xf32, #tpu.memory_space<vmem>>, vector<8x256xf32>
    %c0_1 = arith.constant 0 : index
    %c0_2 = arith.constant 0 : index
    %1 = vector.load %arg2[%c0_1, %c0_2] : memref<8x256xf32, #tpu.memory_space<vmem>>, vector<8x256xf32>
    tpu.vector_store %arg2[%c0_1, %c0_2], %0 {strides = array<i32>} : memref<8x256xf32, #tpu.memory_space<vmem>>, vector<8x256xf32>,
    return
  }
  func.func @transform_0(%arg0: i32) -> (i32, i32) {
    %c0_i32 = arith.constant 0 : i32
    %c0_i32_0 = arith.constant 0 : i32
    return %arg0, %c0_i32 : i32, i32
  }
  func.func @transform_1(%arg0: i32) -> (i32, i32) {
    %c0_i32 = arith.constant 0 : i32
    %c0_i32_0 = arith.constant 0 : i32
    return %arg0, %c0_i32 : i32, i32
  }
}

</mosaic_0001>

<bundles_post_ra>
// kernel: tpu_custom_call.1
= control target key start
LH: loop header
LB: loop body
LE: loop exit
PB: predicated region body
PF: predicated region fallthrough
CT: control target
= control target key end

     0   :  { %6 = vsyncpa [#allocation3], 0  ;;  %s116_s0 = inlined_call_operand.hbm [shape: f32[8,256], index: 0, kind: input, shape index: {}]   ;;  %s117_s1 = inlined_call_operand.hbm [shape: f32[8,256], index: 1, kind: output, shape index: {}]  }
   0x1   :  { %7 = vsyncpa [#allocation4], 0  ;;  %s13_s8 = sshll.u32 %s116_s0, 4  ;;  %s98_s9 = smov [#allocation2]   ;;  %s14_s8 = int_to_ptr.hbm [resolvable:$true] %s13_s8 }
   0x2   :  { %s15_s10 = sshll.u32 %s98_s9, 4  ;;  %s16_s10 = int_to_ptr.vmem [resolvable:$true] %s15_s10 }
   0x3   :  { %18 = dma.hbm_to_vmem [thread:$0]  %s14_s8, 256, %s16_s10, [#allocation3]  }
   0x4   :  { %94 = dma.done.wait [#allocation3], 256  }
   0x5   :  { %95 = vsyncadd [#allocation3], 4294967040  ;;  %s99_s11 = smov [#allocation5]   ;;  %s34_s15 = sshll.u32 %s117_s1, 4  ;;  %v23_v0 = vld [vmem:[#allocation2] sm:$0xff]  ;;  %v24_v1 = vld [vmem:[#allocation2 + $0x8] sm:$0xff]  ;;  %s35_s15 = int_to_ptr.hbm [resolvable:$true] %s34_s15 }
   0x6   :  { %s32_s12 = sshll.u32 %s99_s11, 4  ;;  %25 = vst [vmem:[#allocation5] sm:$0xff] %v23_v0  ;;  %s33_s12 = int_to_ptr.vmem [resolvable:$true] %s32_s12 }
   0x7   :  { %26 = vst [vmem:[#allocation5 + $0x8] sm:$0xff] %v24_v1 }
   0x8   :  { %37 = dma.vmem_to_hbm [thread:$0]  %s33_s12, 256, %s35_s15, [#allocation4]  }
   0x9   :  { %96 = dma.done.wait [#allocation4], 256  }
   0xa   :  { %97 = vsyncadd [#allocation4], 4294967040 }
   0xb   :  { %42 = vsyncpa [#allocation3], 1 }
   0xc   :  { %43 = vsyncpa [#allocation4], 1 }

</bundles_post_ra>
